<compile_context>
chip_gen: v5e
topology: v5e:2x2
jax: 0.10.0
libtpu: 0.0.40
codegen_flags: <defaults>
</compile_context>

<pallas_src>
import functools
import math

import jax
import jax.numpy as jnp
from jax.experimental import pallas as pl
from jax.experimental.pallas import tpu as pltpu


def _build_pe_table(d_model: int, max_len: int, dtype=jnp.float32) -> jnp.ndarray:
    """Deterministic sinusoidal PE table, identical math to the torch __init__."""
    position = jnp.arange(0, max_len, dtype=jnp.float32)[:, None]            # (max_len, 1)
    div_term = jnp.exp(
        jnp.arange(0, d_model, 2, dtype=jnp.float32) * (-math.log(10000.0) / d_model)
    )                                                                         # (d_model//2,)
    pe = jnp.zeros((max_len, d_model), dtype=jnp.float32)
    pe = pe.at[:, 0::2].set(jnp.sin(position * div_term))
    pe = pe.at[:, 1::2].set(jnp.cos(position * div_term))
    return pe.astype(dtype)                                                   # (max_len, d_model)


def _uniform_hash_u32(shape, row_offset, row_stride, seed_u32):
    """Stateless per-element 32-bit hash (murmur3 fmix32) of the global index."""
    r = jax.lax.broadcasted_iota(jnp.int32, shape, 0) + row_offset
    c = jax.lax.broadcasted_iota(jnp.int32, shape, 1)
    h = (r * jnp.int32(row_stride) + c).astype(jnp.uint32)
    h = h * jnp.uint32(0x9E3779B1) + seed_u32
    h = h ^ (h >> 16)
    h = h * jnp.uint32(0x85EBCA6B)
    h = h ^ (h >> 13)
    h = h * jnp.uint32(0xC2B2AE35)
    h = h ^ (h >> 16)
    return h


def _pe_dropout_kernel(seed_ref, x_ref, pe_ref, o_ref, *,
                       p: float, training: bool, batch: int, seq_tile: int):
    # x_ref: (ts, B*D) block of x (input dtype); pe_ref: (ts, D) block of the PE table.
    x = x_ref[...]
    pe = pe_ref[...]
    if batch > 1:
        # Lane-replicate pe across the flattened batch axis (cheap VMEM-local concat;
        # avoids reading a B-times-larger pe table from HBM).
        pe = jnp.concatenate([pe] * batch, axis=-1)                 # (ts, B*D)
    y = x + pe                                                      # add in input dtype

    if training and p > 0.0:
        # nn.Dropout(p): zero each element with prob p, scale survivors by 1/(1-p).
        # TODO(synk): cannot bit-match PyTorch's RNG stream; stateless hash PRNG used.
        keep_threshold = min(int(round((1.0 - p) * 2.0 ** 32)), 2 ** 32 - 1)
        row_offset = pl.program_id(0) * seq_tile                    # global seq offset
        bits = _uniform_hash_u32(y.shape, row_offset, y.shape[-1],
                                 seed_ref[0].astype(jnp.uint32))
        keep = bits < jnp.uint32(keep_threshold)                    # P(keep) = 1 - p
        scale = jnp.asarray(1.0 / (1.0 - p), dtype=y.dtype)
        y = y * jnp.where(keep, scale, jnp.zeros_like(scale))       # single select + mul

    o_ref[...] = y.astype(o_ref.dtype)


def _choose_seq_tile(S, row_bytes, target_bytes=2 * 1024 * 1024):
    """MiB-scale seq tile (amortizes ~0.35us/step grid overhead), multiple of 8,
    capped so there are >=2 grid steps when possible (v7x has 2 TensorCores)."""
    target_rows = max(8, target_bytes // max(int(row_bytes), 1))
    half = -(-S // 2)                       # ceil(S/2)
    half = max(8, ((half + 7) // 8) * 8)
    target_rows = min(target_rows, half)
    if target_rows >= S:
        return S                            # single full block (block == array dim is legal)
    return max(8, (target_rows // 8) * 8)


def positional_encoding_forward(x, pe_table, *, p=0.1, training=False, seed=0,
                                target_block_bytes=2 * 1024 * 1024):
    """x: (S, B, D). pe_table: (max_len, D). Returns (S, B, D) in x.dtype."""
    S, B, D = x.shape
    assert pe_table.shape[0] >= S and pe_table.shape[1] == D
    dtype = x.dtype

    pe_slice = pe_table[:S, :].astype(dtype)            # (S, D)  == pe[:x.size(0)]
    x2d = x.reshape(S, B * D)                           # free row-major reshape
    seed_arr = jnp.asarray([seed], dtype=jnp.int32)

    row_bytes = B * D * jnp.dtype(dtype).itemsize
    ts = _choose_seq_tile(S, row_bytes, target_block_bytes)
    grid = (pl.cdiv(S, ts),)                            # S need not divide ts

    kernel = functools.partial(_pe_dropout_kernel, p=float(p),
                               training=bool(training), batch=B, seq_tile=ts)

    out2d = pl.pallas_call(
        kernel,
        out_shape=jax.ShapeDtypeStruct((S, B * D), dtype),
        grid_spec=pltpu.PrefetchScalarGridSpec(
            num_scalar_prefetch=1,                      # seed -> SMEM
            grid=grid,
            in_specs=[
                pl.BlockSpec((ts, B * D), lambda i, seed: (i, 0)),   # x tile (lane-dense)
                pl.BlockSpec((ts, D), lambda i, seed: (i, 0)),       # pe tile
            ],
            out_specs=pl.BlockSpec((ts, B * D), lambda i, seed: (i, 0)),
        ),
        compiler_params=pltpu.CompilerParams(
            dimension_semantics=("parallel",),          # shard seq steps across TCs
            vmem_limit_bytes=32 * 1024 * 1024,          # headroom on v5e; safe on v6e/v7x
        ),
    )(seed_arr, x2d, pe_slice)

    return out2d.reshape(S, B, D)


if __name__ == "__main__":
    d_model = 128
    max_len = 5000
    S, B = 16, 2
    p = 0.1

    key = jax.random.PRNGKey(0)
    x = jax.random.normal(key, (S, B, d_model), dtype=jnp.float32)
    pe_table = _build_pe_table(d_model, max_len)

    # Eval-mode forward (dropout is identity): exact semantics of the module in .eval().
    y_eval = positional_encoding_forward(x, pe_table, p=p, training=False)
    jax.block_until_ready(y_eval)

    ref = x + pe_table[:S, None, :]
    assert y_eval.shape == x.shape
    assert jnp.allclose(y_eval, ref, atol=1e-5), "eval-mode mismatch vs reference"

    # Training-mode forward (in-kernel dropout mask + 1/(1-p) scaling).
    y_train = positional_encoding_forward(x, pe_table, p=p, training=True, seed=42)
    jax.block_until_ready(y_train)

    scale = 1.0 / (1.0 - p)
    dropped = (y_train == 0.0)
    kept_ok = dropped | jnp.isclose(y_train, ref * scale, atol=1e-5)
    assert bool(jnp.all(kept_ok)), "kept elements must equal scaled reference"
    frac = float(jnp.mean(dropped.astype(jnp.float32)))
    assert 0.01 < frac < 0.30, f"dropout fraction implausible: {frac}"

    print("KERNEL_OK")
</pallas_src>

<mosaic_0001>
module attributes {stable_mosaic.version = 11 : i64} {
  func.func @_pe_dropout_kernel(%arg0: i32, %arg1: memref<1xi32, #tpu.memory_space<smem>>, %arg2: memref<8x256xf32, #tpu.memory_space<vmem>>, %arg3: memref<8x128xf32, #tpu.memory_space<vmem>>, %arg4: memref<8x256xf32, #tpu.memory_space<vmem>>) attributes {dimension_semantics = [#tpu.dimension_semantics<parallel>], iteration_bounds = array<i64: 2>, scalar_prefetch = 1 : i64, scratch_operands = 0 : i64, tpu.core_type = #tpu.core_type<tc>, window_params = [{transform_indices = @transform_0, window_bounds = array<i64: 8, 256>}, {transform_indices = @transform_1, window_bounds = array<i64: 8, 128>}, {transform_indices = @transform_2, window_bounds = array<i64: 8, 256>}]} {
    %c0 = arith.constant 0 : index
    %c0_0 = arith.constant 0 : index
    %0 = vector.load %arg2[%c0, %c0_0] : memref<8x256xf32, #tpu.memory_space<vmem>>, vector<8x256xf32>
    %c0_1 = arith.constant 0 : index
    %c0_2 = arith.constant 0 : index
    %1 = vector.load %arg3[%c0_1, %c0_2] : memref<8x128xf32, #tpu.memory_space<vmem>>, vector<8x128xf32>
    %2 = tpu.concatenate %1, %1 in 1 : vector<8x128xf32>, vector<8x128xf32> -> vector<8x256xf32>
    %3 = arith.addf %0, %2 : vector<8x256xf32>
    %c0_3 = arith.constant 0 : index
    %c0_4 = arith.constant 0 : index
    %4 = vector.load %arg4[%c0_3, %c0_4] : memref<8x256xf32, #tpu.memory_space<vmem>>, vector<8x256xf32>
    tpu.vector_store %arg4[%c0_3, %c0_4], %3 {strides = array<i32>} : memref<8x256xf32, #tpu.memory_space<vmem>>, vector<8x256xf32>,
    return
  }
  func.func @transform_0(%arg0: i32, %arg1: memref<1xi32, #tpu.memory_space<smem>>) -> (i32, i32) {
    %c0_i32 = arith.constant 0 : i32
    %c0_i32_0 = arith.constant 0 : i32
    return %arg0, %c0_i32 : i32, i32
  }
  func.func @transform_1(%arg0: i32, %arg1: memref<1xi32, #tpu.memory_space<smem>>) -> (i32, i32) {
    %c0_i32 = arith.constant 0 : i32
    %c0_i32_0 = arith.constant 0 : i32
    return %arg0, %c0_i32 : i32, i32
  }
  func.func @transform_2(%arg0: i32, %arg1: memref<1xi32, #tpu.memory_space<smem>>) -> (i32, i32) {
    %c0_i32 = arith.constant 0 : i32
    %c0_i32_0 = arith.constant 0 : i32
    return %arg0, %c0_i32 : i32, i32
  }
}

</mosaic_0001>

<bundles_post_ra>
// kernel: tpu_custom_call.1
= control target key start
LH: loop header
LB: loop body
LE: loop exit
PB: predicated region body
PF: predicated region fallthrough
CT: control target
= control target key end

     0   :  { %9 = vsyncpa [#allocation5], 0  ;;  %s705_s0 = inlined_call_operand.<no memory space> [shape: s32[1], index: 0, kind: input, shape index: {}]   ;;  %s706_s1 = inlined_call_operand.hbm [shape: f32[16,256], index: 1, kind: input, shape index: {}]   ;;  %s707_s2 = inlined_call_operand.hbm [shape: f32[16,128], index: 2, kind: input, shape index: {}]   ;;  %s708_s3 = inlined_call_operand.hbm [shape: f32[16,256], index: 3, kind: output, shape index: {}]  }
   0x1   :  { %11 = vsyncpa [#allocation5 + $0x1], 0 }
   0x2   :  { %12 = vsyncpa [#allocation8], 0 }
   0x3   :  { %14 = vsyncpa [#allocation8 + $0x1], 0 }
   0x4   :  { %15 = vsyncpa [#allocation6], 0 }
   0x5   :  { %17 = vsyncpa [#allocation6 + $0x1], 0  ;;  %s542_s12 = smov 0   ;;  %s544_s13 = smov 0  }
   0x6   :  { %s546_s0 = smov 0   ;;  %s548_s14 = smov 0  }
   0x7 LB: > { %s563_s15 = sadd.s32 4294967295, %s520_s14   ;;  %s320_s16 = sadd.s32 4294967294, %s520_s14   ;;  %s520_s14 = sphi %s548_s14, %s719_s14   ;;  %s516_s0 = sphi %s546_s0, %s718_s0   ;;  %s512_s13 = sphi %s544_s13, %s717_s13   ;;  %s508_s12 = sphi %s542_s12, %s716_s12  }
   0x8   : > { %s567_s17 = sadd.s32 1, %s520_s14   ;;  %s30_s18 = sadd.s32 1, %s516_s0 }
   0x9   : > { %s27_s19 = ssub.s32 %s520_s14, %s567_s17  ;;  %p37_p0 = scmp.ne.s32.totalorder %s516_s0, %s512_s13 }
   0xa   : > { %p28_p1 = scmp.eq.s32.totalorder %s27_s19, 0  ;;  %p38_p2 = scmp.eq.s32.totalorder %s520_s14, 0 }
   0xb   : > { %p43_p3 = scmp.ne.s32.totalorder %s512_s13, %s508_s12  ;;  %p44_p4 = scmp.eq.s32.totalorder %s563_s15, 0 }
   0xc   : > { %s579_s20 = scalar_select %p28_p1, %s516_s0, %s30_s18  }
   0xd   : > { %p581_p5 = por %p38_p2, %p37_p0  ;;  %p585_p6 = por %p44_p4, %p43_p3 }
   0xe   : > { %p93_p7 = scmp.eq.s32.totalorder %s563_s15, 1  ;;  %p99_p8 = scmp.eq.s32.totalorder %s320_s16, 1 }
   0xf   : > { %p356_p10 = scmp.lt.s32.totalorder %s520_s14, 2  ;;  %s601_s25 = sand.u32 1, %s516_s0  }
  0x10   : > { %p592_p11 = por %p93_p7, %p37_p0  ;;  %p596_p12 = por %p99_p8, %p43_p3 }
  0x11   : > { %s337_s26 = sshll.u32 %s520_s14, 4  ;;  %s323_s27 = sshll.u32 %s601_s25, 4 }
  0x12   : > { %s128_s30 = scalar_lea.hbm %s706_s1, %s337_s26  ;;  %s123_s5 = scalar_lea.vmem [#allocation4], %s323_s27 }
  0x13   : > { %s130_s4 = sshll.u32 %s128_s30, 4  ;;  %s132_s6 = sshll.u32 %s123_s5, 4  ;;  %s131_s4 = int_to_ptr.hbm [resolvable:$true] %s130_s4  ;;  %s133_s6 = int_to_ptr.vmem [resolvable:$true] %s132_s6 }
  0x14   : > { %p610_p13 = pnand %p356_p10, %p581_p5  ;;  %p328_p0 = scmp.ge.s32.totalorder %s520_s14, 1 }
  0x15   : > { %p156_p1 = scmp.lt.s32.totalorder %s520_s14, 3  ;;  %s326_s8 = sshll.u32 %s601_s25, 3 }
  0x16   : > { %s120_s9 = scalar_lea.sflag [#allocation5], %s601_s25  ;;  %s390_s10 = sshra.s32 %s131_s4, 4  ;;  %s391_s10 = int_to_ptr.hbm [resolvable:$true] %s390_s10 }
  0x17   : > { %s392_s11 = scalar_lea.hbm %s391_s10, 16  ;;  %p394_p3 = pneg %p610_p13 }
  0x18   : > { %p393_p2 = scmp.ne.s32.totalorder %s391_s10, %s392_s11  ;;  %s397_s19 = scalar_lea.hbm %s706_s1, 32 }
  0x19   : > { %p398_p5 = scmp.lt.s32.totalorder %s391_s10, %s706_s1  ;;  %p399_p8 = scmp.lt.s32.totalorder %s397_s19, %s392_s11 }
  0x1a   : > { %p395_p4 = pnand %p394_p3, %p393_p2 }
  0x1b   : > { %p400_p10 = por %p399_p8, %p398_p5 }
  0x1c   : > { %p396_p7 = pneg %p395_p4 }
  0x1e   : > { %p401_p9 = pnand %p400_p10, %p396_p7 }
  0x20   : > { %404 = shalt.err (!%p401_p9)
}
  0x21   : > { %348 = dma.hbm_to_vmem [thread:$0]  (!%p610_p13), %s131_s4, 256, %s133_s6, %s120_s9  }
  0x22   : > { %p635_p2 = pnand %p328_p0, %p156_p1  ;;  %s327_s28 = sshll.u32 %s520_s14, 3 }
  0x23   : > { %s143_s29 = scalar_lea.vmem [#allocation7], %s326_s8  ;;  %s147_s11 = scalar_lea.hbm %s707_s2, %s327_s28 }
  0x24   : > { %s151_s30 = sshll.u32 %s143_s29, 4  ;;  %s149_s16 = sshll.u32 %s147_s11, 4  ;;  %s152_s30 = int_to_ptr.vmem [resolvable:$true] %s151_s30  ;;  %s150_s16 = int_to_ptr.hbm [resolvable:$true] %s149_s16 }
  0x25   : > { %s140_s18 = scalar_lea.sflag [#allocation8], %s601_s25  ;;  %s420_s19 = sshra.s32 %s150_s16, 4  ;;  %s421_s19 = int_to_ptr.hbm [resolvable:$true] %s420_s19 }
  0x26   : > { %s422_s4 = scalar_lea.hbm %s421_s19, 8  ;;  %s427_s8 = scalar_lea.hbm %s707_s2, 16 }
  0x27   : > { %p423_p9 = scmp.ne.s32.totalorder %s421_s19, %s422_s4  ;;  %p428_p4 = scmp.lt.s32.totalorder %s421_s19, %s707_s2 }
  0x28   : > { %p429_p7 = scmp.lt.s32.totalorder %s427_s8, %s422_s4 }
  0x29   : > { %p425_p0 = pnand %p423_p9, %p394_p3 }
  0x2a   : > { %p430_p5 = por %p429_p7, %p428_p4 }
  0x2b   : > { %p426_p1 = pneg %p425_p0 }
  0x2d   : > { %p431_p8 = pnand %p430_p5, %p426_p1 }
  0x2f   : > { %434 = shalt.err (!%p431_p8)
}
  0x30   : > { %351 = dma.hbm_to_vmem [thread:$0]  (!%p610_p13), %s150_s16, 128, %s152_s30, %s140_s18  }
  0x31   : > { %160 = sbr.rel (%p635_p2) target bundleno = 73 (0x49), region = 28  ;;  %s658_s25 = sand.u32 (!%p635_p2), 1, %s512_s13  }
  0x32   : > { %s329_s28 = sshll.u32 (!%p635_p2), %s658_s25, 4  ;;  %s163_s29 = scalar_lea.sflag (!%p635_p2), [#allocation5], %s658_s25 }
  0x33   : > { %s166_s5 = scalar_lea.vmem (!%p635_p2), [#allocation4], %s329_s28 }
  0x36   : > { %495 = dma.done.wait (%p585_p6), %s163_s29, 256  }
  0x37   : > { %497 = vsyncadd (%p585_p6), %s163_s29, 4294967040  ;;  %s330_s7 = sshll.u32 %s658_s25, 3  ;;  %s173_s27 = scalar_lea.sflag [#allocation8], %s658_s25 }
  0x38   : > { %s176_s30 = scalar_lea.vmem [#allocation7], %s330_s7 }
  0x39   : > { %499 = dma.done.wait (%p585_p6), %s173_s27, 128  }
  0x3a   : > { %501 = vsyncadd (%p585_p6), %s173_s27, 4294967168  ;;  %s338_s10 = sshll.u32 %s563_s15, 4  ;;  %s202_s19 = scalar_lea.vmem [#allocation9], %s329_s28  ;;  %v203_v0 = vld [vmem:[%s166_s5] sm:$0xff]  ;;  %v204_v2 = vld [vmem:[%s166_s5 + $0x8] sm:$0xff] }
  0x3b   : > { %s222_s18 = scalar_lea.hbm %s708_s3, %s338_s10  ;;  %s224_s4 = sshll.u32 %s202_s19, 4  ;;  %v205_v1 = vld [vmem:[%s176_s30] sm:$0xff]  ;;  %s225_s4 = int_to_ptr.vmem [resolvable:$true] %s224_s4 }
  0x3c   : > { %s226_s6 = sshll.u32 %s222_s18, 4  ;;  %v206_v3 = vadd.f32 %v205_v1, %v203_v0  ;;  %v207_v4 = vadd.f32 %v205_v1, %v204_v2  ;;  %s211_s22 = scalar_lea.sflag [#allocation6], %s658_s25  ;;  %s227_s6 = int_to_ptr.hbm [resolvable:$true] %s226_s6 }
  0x3d   : > { %s464_s9 = sshra.s32 %s227_s6, 4  ;;  %s470_s26 = scalar_lea.hbm %s708_s3, 32  ;;  %s465_s9 = int_to_ptr.hbm [resolvable:$true] %s464_s9 }
  0x3e   : > { %208 = vst [vmem:[%s202_s19] sm:$0xff] %v206_v3  ;;  %s466_s15 = scalar_lea.hbm %s465_s9, 16  ;;  %p471_p10 = scmp.lt.s32.totalorder %s465_s9, %s708_s3 }
  0x3f   : > { %209 = vst [vmem:[%s202_s19 + $0x8] sm:$0xff] %v207_v4  ;;  %p467_p6 = scmp.ne.s32.totalorder %s465_s9, %s466_s15  ;;  %p472_p2 = scmp.lt.s32.totalorder %s470_s26, %s466_s15 }
  0x41   : > { %p468_p13 = pnand %p467_p6, %p592_p11  ;;  %p473_p9 = por %p472_p2, %p471_p10 }
  0x43   : > { %p469_p3 = pneg %p468_p13 }
  0x45   : > { %p474_p0 = pnand %p473_p9, %p469_p3 }
  0x47   : > { %477 = shalt.err (!%p474_p0)
}
  0x48   : > { %343 = dma.vmem_to_hbm [thread:$0]  (%p592_p11), %s225_s4, 256, %s227_s6, %s211_s22  }
  0x49 PF: > { %s238_s25 = sand.u32 1, %s508_s12   ;;  %p715_p1 = scmp.ge.s32.totalorder %s520_s14, 2 }
  0x4a   : > { %s239_s5 = scalar_lea.sflag [#allocation6], %s238_s25 }
  0x4b   : > { %p353_p4 = pnand %p715_p1, %p596_p12 }
  0x4d   : > { %p354_p7 = pneg %p353_p4 }
  0x4f   : > { %503 = dma.done.wait (%p354_p7), %s239_s5, 256  }
  0x50   : > { %505 = vsyncadd (%p354_p7), %s239_s5, 4294967040  ;;  %p20_p5 = scmp.ge.s32.totalorder %s567_s17, 4   ;;  %s716_s12 = smov %s512_s13 }
  0x51   : > { %s717_s13 = smov %s516_s0  ;;  %s718_s0 = smov %s579_s20 }
  0x52   : > { %s719_s14 = smov %s567_s17  ;;  %22 = sbr.rel (!%p20_p5) target bundleno = 7 (0x7), region = 86 }
  0x57   :  { %245 = vsyncpa [#allocation5], 1 }
  0x58   :  { %247 = vsyncpa [#allocation5 + $0x1], 1 }
  0x59   :  { %248 = vsyncpa [#allocation8], 1 }
  0x5a   :  { %250 = vsyncpa [#allocation8 + $0x1], 1 }
  0x5b   :  { %251 = vsyncpa [#allocation6], 1 }
  0x5c   :  { %253 = vsyncpa [#allocation6 + $0x1], 1 }

</bundles_post_ra>
